<compile_context>
chip_gen: v6e
topology: v6e:2x2x1
jax: 0.10.0
libtpu: 0.0.40
codegen_flags: <defaults>
</compile_context>

<pallas_src>
import jax
import jax.numpy as jnp
from jax.experimental import pallas as pl
from jax.experimental.pallas import tpu as pltpu

_LANE = 128            # lane width: last block dim should be a multiple of this
_SUBLANE = 8
_MAX_TILE_TOKENS = 16384  # soft cap: keeps per-step DMA MiB-scale (>> 0.35us step overhead)


def _cdiv(a, b):
    return (a + b - 1) // b


def _round_up(x, m):
    return _cdiv(x, m) * m


def _vmem_capacity_bytes():
    """Per-core VMEM capacity; conservative fallback if the query fails."""
    try:
        return int(pltpu.get_tpu_info().vmem_capacity_bytes)
    except Exception:
        return 64 * 1024 * 1024  # v7x per-core VMEM (smallest of the targets)


def _choose_tile_s(s_tokens, budget_tokens, batch):
    """Tokens (lanes) per grid step: a multiple of 128 (or the full S), sized
    from the VMEM budget; total step count nudged even for v7x's 2 TCs."""
    budget_tokens = max(_LANE, min(budget_tokens, _MAX_TILE_TOKENS))
    if budget_tokens >= s_tokens:
        tile = s_tokens                          # single full (lane-dense) block
    else:
        tile = (budget_tokens // _LANE) * _LANE  # multiple of 128, ragged tail masked
    n_s = _cdiv(s_tokens, tile)
    if (batch * n_s) % 2 == 1 and s_tokens > _LANE:
        # Odd total step count => one v7x TensorCore idles on the last step.
        n_s2 = n_s + 1
        tile2 = _round_up(_cdiv(s_tokens, n_s2), _LANE)
        if tile2 <= tile and _cdiv(s_tokens, tile2) == n_s2:
            tile = tile2
    return tile


def _mlp_kernel(x_ref, w1t_ref, b1_ref, w2t_ref, b2_ref, o_ref):
    """out = W2^T @ relu(W1^T @ x + b1) + b2 + x for one (D, tile_s) slab."""
    x = x_ref[0]  # [D, tile_s], native dtype; MXU accumulates in f32 below

    h = jnp.dot(w1t_ref[...], x, preferred_element_type=jnp.float32)      # [H, tile_s]
    h = jnp.maximum(h + b1_ref[...].astype(jnp.float32), 0.0)
    # TODO(synk): Dropout(p=0.15) is identity in eval mode; training-mode
    # stochastic masking (pltpu.prng_seed / prng_random_bits) is not implemented.

    y = jnp.dot(w2t_ref[...], h.astype(w2t_ref.dtype),
                preferred_element_type=jnp.float32)                       # [H, tile_s]
    y = y + b2_ref[...].astype(jnp.float32)

    o_ref[0] = (y + x.astype(jnp.float32)).astype(o_ref.dtype)


def _mlp_pallas(x_s, w1_t, b1, w2_t, b2):
    """x_s: [B, D, S]; w1_t: [H, D]; b1: [H, 1]; w2_t: [H, H]; b2: [H, 1].
    H == D (residual). Returns [B, D, S]."""
    B, D, S = x_s.shape
    H = w1_t.shape[0]
    x_bytes = jnp.dtype(x_s.dtype).itemsize
    w_bytes = jnp.dtype(w1_t.dtype).itemsize

    cap = _vmem_capacity_bytes()
    usable = int(0.85 * cap)
    # Weights/biases use Buffered(1) with a constant index_map -> one copy each.
    weights_bytes = (H * D + H * H + 2 * H) * w_bytes
    # Per token: double-buffered x and out slabs + f32 h/y intermediates.
    per_token = 2 * (D + H) * x_bytes + 2 * H * 4
    budget_tokens = (usable - weights_bytes) // per_token
    tile_s = _choose_tile_s(S, budget_tokens, B)
    n_s = _cdiv(S, tile_s)
    # TODO(synk): if weights_bytes alone exceeds the VMEM budget (f32 D >~ 2.5k
    # on v7x), add an "arbitrary" grid axis over H chunks with an f32 VMEM
    # accumulator instead of keeping the weights fully resident.

    footprint = weights_bytes + tile_s * per_token
    vmem_limit = int(min(max(int(1.25 * footprint) + (2 << 20), 32 << 20),
                         int(0.90 * cap)))

    resident = dict(pipeline_mode=pl.Buffered(1))  # constant index_map => single buffer

    return pl.pallas_call(
        _mlp_kernel,
        out_shape=jax.ShapeDtypeStruct((B, D, S), x_s.dtype),
        grid_spec=pltpu.PrefetchScalarGridSpec(
            num_scalar_prefetch=0,
            grid=(B, n_s),
            in_specs=[
                pl.BlockSpec((1, D, tile_s), lambda b, s: (b, 0, s)),    # x slab
                pl.BlockSpec((H, D), lambda b, s: (0, 0), **resident),   # W1^T (resident)
                pl.BlockSpec((H, 1), lambda b, s: (0, 0), **resident),   # b1
                pl.BlockSpec((H, H), lambda b, s: (0, 0), **resident),   # W2^T (resident)
                pl.BlockSpec((H, 1), lambda b, s: (0, 0), **resident),   # b2
            ],
            out_specs=pl.BlockSpec((1, D, tile_s), lambda b, s: (b, 0, s)),
        ),
        compiler_params=pltpu.CompilerParams(
            dimension_semantics=("parallel", "parallel"),
            vmem_limit_bytes=vmem_limit),
    )(x_s, w1_t, b1, w2_t, b2)


@jax.jit
def mlp_forward(x, params):
    """Forward of MultiLayerPerceptron. x: [B, D, N] or NCHW [B, D, N, W]."""
    squeeze = x.ndim == 3
    if squeeze:
        x = x[..., None]
    B, D, N, W = x.shape
    H = params["w1"].shape[1]
    assert D == H, "residual link requires input_dim == hidden_dim"
    S = N * W

    x_s = x.reshape(B, D, S)            # contiguous reshape: no HBM transpose pass
    w1_t = jnp.transpose(params["w1"])  # [H, D] -- tiny, one-time
    w2_t = jnp.transpose(params["w2"])  # [H, H]
    b1 = params["b1"].reshape(H, 1)
    b2 = params["b2"].reshape(H, 1)

    y = _mlp_pallas(x_s, w1_t, b1, w2_t, b2).reshape(B, D, N, W)
    return y[..., 0] if squeeze else y


def init_params(key, input_dim, hidden_dim, dtype=jnp.float32):
    """PyTorch Conv2d default init; weight (O, I, 1, 1) stored as matmul (I, O).
    For bf16 deployment, cast weights/activations once here (kernel keeps f32
    accumulation + f32 bias/ReLU/residual epilogue)."""
    k1, k2, k3, k4 = jax.random.split(key, 4)
    bound1 = 1.0 / (input_dim ** 0.5)
    bound2 = 1.0 / (hidden_dim ** 0.5)
    return {
        "w1": jax.random.uniform(k1, (input_dim, hidden_dim), dtype, -bound1, bound1),
        "b1": jax.random.uniform(k2, (hidden_dim,), dtype, -bound1, bound1),
        "w2": jax.random.uniform(k3, (hidden_dim, hidden_dim), dtype, -bound2, bound2),
        "b2": jax.random.uniform(k4, (hidden_dim,), dtype, -bound2, bound2),
    }


def _reference_forward(x, params):
    """Pure-JAX reference of the PyTorch module (eval mode)."""
    B, D, N, W = x.shape
    x_tok = jnp.transpose(x, (0, 2, 3, 1)).reshape(-1, D)
    h = jnp.maximum(x_tok @ params["w1"] + params["b1"], 0.0)
    y = h @ params["w2"] + params["b2"] + x_tok
    return jnp.transpose(y.reshape(B, N, W, D), (0, 3, 1, 2))


if __name__ == "__main__":
    key = jax.random.PRNGKey(0)
    kx, kp = jax.random.split(key)

    B, D, N, W = 2, 32, 16, 16          # residual => hidden_dim == input_dim == D
    x = jax.random.normal(kx, (B, D, N, W), dtype=jnp.float32)  # NCHW
    params = init_params(kp, D, D)

    out = jax.block_until_ready(mlp_forward(x, params))
    ref = _reference_forward(x, params)

    assert out.shape == x.shape
    assert jnp.allclose(out, ref, atol=1e-5, rtol=1e-5), "mismatch vs reference"
    print("KERNEL_OK")
</pallas_src>

<mosaic_0001>
module attributes {stable_mosaic.version = 11 : i64} {
  func.func @_mlp_kernel(%arg0: i32, %arg1: i32, %arg2: memref<1x32x256xf32, #tpu.memory_space<vmem>>, %arg3: memref<32x32xf32, #tpu.memory_space<vmem>>, %arg4: memref<32x1xf32, #tpu.memory_space<vmem>>, %arg5: memref<32x32xf32, #tpu.memory_space<vmem>>, %arg6: memref<32x1xf32, #tpu.memory_space<vmem>>, %arg7: memref<1x32x256xf32, #tpu.memory_space<vmem>>) attributes {dimension_semantics = [#tpu.dimension_semantics<parallel>, #tpu.dimension_semantics<parallel>], iteration_bounds = array<i64: 2, 1>, scalar_prefetch = 0 : i64, scratch_operands = 0 : i64, tpu.core_type = #tpu.core_type<tc>, window_params = [{transform_indices = @transform_0, window_bounds = array<i64: 1, 32, 256>}, {pipeline_mode = #tpu.pipeline_mode<synchronous>, transform_indices = @transform_1, window_bounds = array<i64: 32, 32>}, {pipeline_mode = #tpu.pipeline_mode<synchronous>, transform_indices = @transform_2, window_bounds = array<i64: 32, 1>}, {pipeline_mode = #tpu.pipeline_mode<synchronous>, transform_indices = @transform_3, window_bounds = array<i64: 32, 32>}, {pipeline_mode = #tpu.pipeline_mode<synchronous>, transform_indices = @transform_4, window_bounds = array<i64: 32, 1>}, {transform_indices = @transform_5, window_bounds = array<i64: 1, 32, 256>}]} {
    %c0 = arith.constant 0 : index
    %c0_0 = arith.constant 0 : index
    %c0_1 = arith.constant 0 : index
    %0 = vector.load %arg2[%c0, %c0_0, %c0_1] : memref<1x32x256xf32, #tpu.memory_space<vmem>>, vector<1x32x256xf32>
    %1 = vector.shape_cast %0 : vector<1x32x256xf32> to vector<32x256xf32>
    %c0_2 = arith.constant 0 : index
    %c0_3 = arith.constant 0 : index
    %2 = vector.load %arg3[%c0_2, %c0_3] : memref<32x32xf32, #tpu.memory_space<vmem>>, vector<32x32xf32>
    %cst = arith.constant dense<0.000000e+00> : vector<32x256xf32>
    %3 = tpu.matmul %2, %1, %cst {dimension_numbers = #tpu.dot_dimension_numbers<[1], [0], [0], [1], [0, 0, 1, 1], [], []>} : vector<32x32xf32>, vector<32x256xf32>, vector<32x256xf32> -> vector<32x256xf32>
    %c0_4 = arith.constant 0 : index
    %c0_5 = arith.constant 0 : index
    %4 = vector.load %arg4[%c0_4, %c0_5] : memref<32x1xf32, #tpu.memory_space<vmem>>, vector<32x1xf32>
    %5 = vector.broadcast %4 : vector<32x1xf32> to vector<32x256xf32>
    %6 = arith.addf %3, %5 : vector<32x256xf32>
    %cst_6 = arith.constant 0.000000e+00 : f32
    %7 = vector.broadcast %cst_6 : f32 to vector<32x256xf32>
    %8 = arith.maximumf %6, %7 : vector<32x256xf32>
    %c0_7 = arith.constant 0 : index
    %c0_8 = arith.constant 0 : index
    %9 = vector.load %arg5[%c0_7, %c0_8] : memref<32x32xf32, #tpu.memory_space<vmem>>, vector<32x32xf32>
    %cst_9 = arith.constant dense<0.000000e+00> : vector<32x256xf32>
    %10 = tpu.matmul %9, %8, %cst_9 {dimension_numbers = #tpu.dot_dimension_numbers<[1], [0], [0], [1], [0, 0, 1, 1], [], []>} : vector<32x32xf32>, vector<32x256xf32>, vector<32x256xf32> -> vector<32x256xf32>
    %c0_10 = arith.constant 0 : index
    %c0_11 = arith.constant 0 : index
    %11 = vector.load %arg6[%c0_10, %c0_11] : memref<32x1xf32, #tpu.memory_space<vmem>>, vector<32x1xf32>
    %12 = vector.broadcast %11 : vector<32x1xf32> to vector<32x256xf32>
    %13 = arith.addf %10, %12 : vector<32x256xf32>
    %14 = arith.addf %13, %1 : vector<32x256xf32>
    %c0_12 = arith.constant 0 : index
    %c0_13 = arith.constant 0 : index
    %c0_14 = arith.constant 0 : index
    %15 = vector.load %arg7[%c0_12, %c0_13, %c0_14] : memref<1x32x256xf32, #tpu.memory_space<vmem>>, vector<1x32x256xf32>
    %16 = vector.shape_cast %15 : vector<1x32x256xf32> to vector<32x256xf32>
    %17 = vector.shape_cast %14 : vector<32x256xf32> to vector<1x32x256xf32>
    tpu.vector_store %arg7[%c0_12, %c0_13, %c0_14], %17 {strides = array<i32>} : memref<1x32x256xf32, #tpu.memory_space<vmem>>, vector<1x32x256xf32>,
    return
  }
  func.func @transform_0(%arg0: i32, %arg1: i32) -> (i32, i32, i32) {
    %c0_i32 = arith.constant 0 : i32
    %c0_i32_0 = arith.constant 0 : i32
    return %arg0, %c0_i32, %arg1 : i32, i32, i32
  }
  func.func @transform_1(%arg0: i32, %arg1: i32) -> (i32, i32) {
    %c0_i32 = arith.constant 0 : i32
    %c0_i32_0 = arith.constant 0 : i32
    %c0_i32_1 = arith.constant 0 : i32
    return %c0_i32, %c0_i32_0 : i32, i32
  }
  func.func @transform_2(%arg0: i32, %arg1: i32) -> (i32, i32) {
    %c0_i32 = arith.constant 0 : i32
    %c0_i32_0 = arith.constant 0 : i32
    %c0_i32_1 = arith.constant 0 : i32
    return %c0_i32, %c0_i32_0 : i32, i32
  }
  func.func @transform_3(%arg0: i32, %arg1: i32) -> (i32, i32) {
    %c0_i32 = arith.constant 0 : i32
    %c0_i32_0 = arith.constant 0 : i32
    %c0_i32_1 = arith.constant 0 : i32
    return %c0_i32, %c0_i32_0 : i32, i32
  }
  func.func @transform_4(%arg0: i32, %arg1: i32) -> (i32, i32) {
    %c0_i32 = arith.constant 0 : i32
    %c0_i32_0 = arith.constant 0 : i32
    %c0_i32_1 = arith.constant 0 : i32
    return %c0_i32, %c0_i32_0 : i32, i32
  }
  func.func @transform_5(%arg0: i32, %arg1: i32) -> (i32, i32, i32) {
    %c0_i32 = arith.constant 0 : i32
    %c0_i32_0 = arith.constant 0 : i32
    return %arg0, %c0_i32, %arg1 : i32, i32, i32
  }
}

</mosaic_0001>

<bundles_post_ra>
// kernel: mlp_forward.1
= control target key start
LH: loop header
LB: loop body
LE: loop exit
PB: predicated region body
PF: predicated region fallthrough
CT: control target
= control target key end

     0   :  { %s747_s18 = smov 0   ;;  %s749_s19 = smov 0   ;;  %s893_s0 = inlined_call_operand.vmem [shape: f32[2,32,256], index: 0, kind: input, shape index: {}]   ;;  %s894_s1 = inlined_call_operand.vmem [shape: f32[32,32], index: 1, kind: input, shape index: {}]   ;;  %s895_s2 = inlined_call_operand.vmem [shape: f32[32,1], index: 2, kind: input, shape index: {}]   ;;  %s896_s3 = inlined_call_operand.vmem [shape: f32[32,32], index: 3, kind: input, shape index: {}]   ;;  %s897_s4 = inlined_call_operand.vmem [shape: f32[32,1], index: 4, kind: input, shape index: {}]   ;;  %s898_s5 = inlined_call_operand.vmem [shape: f32[2,32,256], index: 5, kind: output, shape index: {}]  }
   0x1   :  { %s751_s20 = smov 0  }
   0x2 LB: > { %s27_s21 = sadd.s32 1, %s709_s19  ;;  %p646_p0 = scmp.ge.s32.totalorder %s713_s20, 1  ;;  %s713_s20 = sphi %s751_s20, %s15_s20   ;;  %s709_s19 = sphi %s749_s19, %s900_s19   ;;  %s705_s18 = sphi %s747_s18, %s899_s18  }
   0x3   : > { %p29_p1 = scmp.ge.s32.totalorder %s27_s21, 2  ;;  %p208_p2 = scmp.lt.s32.totalorder %s713_s20, 3 }
   0x5   : > { %s902_s21 = smov (%p29_p1, %s27_s21), 0  ;;  %p209_p3 = pnand %p646_p0, %p208_p2 }
   0x6   : > { %p245_p4 = scmp.lt.s32.totalorder (!%p209_p3), %s705_s18, 1 }
   0x7   : > { %212 = sbr.rel (%p209_p3) target bundleno = 457 (0x1c9), region = 40 }
   0xc   : > { %v715_v0 = vmov 0.0   ;;  %v277_v1 = vld [vmem:[%s895_s2 + $0x8] sm:$0xff]  ;;  %v279_v2 = vld [vmem:[%s895_s2 + $0x18] sm:$0xff]  ;;  %s904_s18 = smov (!%p245_p4, %s705_s18), 1  ;;  %v716_v3 = vmov 0   ;;  %v276_v4 = vld [vmem:[%s895_s2] sm:$0xff] }
   0xd   : > { %377 = vmatprep.mubr.f32.mxu0 %v715_v0  ;;  %514 = vmatprep.mubr.f32.mxu1 %v715_v0  ;;  %s661_s26 = sshll.u32 %s904_s18, 6  ;;  %v278_v5 = vld [vmem:[%s895_s2 + $0x10] sm:$0xff]  ;;  %v415_v11 = vld [vmem:[%s897_s4 + $0x8] sm:$0xff]  ;;  %v414_v13 = vld [vmem:[%s897_s4] sm:$0xff]  ;;  %vm300_vm0 = vcmask 261120  }
   0xe   : > { %690 = vset.pattern.permute.xlu1 %v716_v3  ;;  %689 = vset.pattern.permute.xlu0 %v716_v3  ;;  %s252_s6 = scalar_lea.vmem %s893_s0, %s661_s26  ;;  %v272_v16 = vld [vmem:[%s894_s1] sm:$0xff]  ;;  %v417_v17 = vld [vmem:[%s897_s4 + $0x18] sm:$0xff]  ;;  %v416_v18 = vld [vmem:[%s897_s4 + $0x10] sm:$0xff]  ;;  %s866_s15 = scalar_lea.vmem %s898_s5, %s661_s26 }
   0xf   : > { %287 = vperm.xlu1 %690, %v277_v1   ;;  %297 = vperm.xlu0 %689, %v279_v2   ;;  %v787_v6 = vld [vmem:[%s252_s6 + $0x38] sm:$0xff]  ;;  %v789_v7 = vld [vmem:[%s252_s6 + $0x30] sm:$0xff]  ;;  %v791_v8 = vld [vmem:[%s252_s6 + $0x28] sm:$0xff] }
  0x10   : > { %337 = vmatprep.subr.mxu0 %v787_v6  ;;  %v794_v9 = vld [vmem:[%s252_s6 + $0x20] sm:$0xff]  ;;  %v797_v10 = vld [vmem:[%s252_s6 + $0x18] sm:$0xff]  ;;  %v803_v12 = vld [vmem:[%s252_s6 + $0x10] sm:$0xff] }
  0x11   : > { %338 = vmatpush1.msra.mxu0 %v789_v7  ;;  %v809_v14 = vld [vmem:[%s252_s6 + $0x8] sm:$0xff]  ;;  %v812_v15 = vld [vmem:[%s252_s6] sm:$0xff]  ;;  %v274_v20 = vld [vmem:[%s894_s1 + $0x10] sm:$0xff] }
  0x12   : > { %339 = vmatprep.subr.mxu0 %v791_v8  ;;  %v273_v19 = vld [vmem:[%s894_s1 + $0x8] sm:$0xff]  ;;  %v275_v21 = vld [vmem:[%s894_s1 + $0x18] sm:$0xff]  ;;  %v410_v50 = vld [vmem:[%s896_s3] sm:$0xff] }
  0x13   : > { %282 = vperm.xlu1 %690, %v276_v4   ;;  %292 = vperm.xlu0 %689, %v278_v5   ;;  %v411_v51 = vld [vmem:[%s896_s3 + $0x8] sm:$0xff]  ;;  %v412_v52 = vld [vmem:[%s896_s3 + $0x10] sm:$0xff]  ;;  %v413_v53 = vld [vmem:[%s896_s3 + $0x18] sm:$0xff] }
  0x14   : > { %340 = vmatpush1.msra.mxu0 %v794_v9 }
  0x15   : > { %341 = vmatprep.subr.mxu0 %v797_v10 }
  0x16   : > { %342 = vmatpush1.msra.mxu0 %v803_v12 }
  0x17   : > { %425 = vperm.xlu1 %690, %v415_v11   ;;  %420 = vperm.xlu0 %689, %v414_v13  }
  0x18   : > { %343 = vmatprep.subr.mxu0 %v809_v14 }
  0x19   : > { %344 = vmatpush1.msra.mxu0 %v812_v15 }
  0x1a   : > { %651 = vmatmul.mubr.msk.f32.vlgmr.msra.gmra.mxu0 %vm300_vm0, %v272_v16 }
  0x1b   : > { %435 = vperm.xlu1 %690, %v417_v17   ;;  %383 = vmatprep.mubr.f32.mxu0 %v715_v0 }
  0x1c   : > { %430 = vperm.xlu0 %689, %v416_v18  }
  0x1e   : > { %652 = vmatmul.mubr.msk.f32.gmra.mxu0 %vm300_vm0, %v273_v19 }
  0x1f   : > { %389 = vmatprep.mubr.f32.mxu0 %v715_v0 }
  0x22   : > { %653 = vmatmul.mubr.msk.f32.gmra.mxu0 %vm300_vm0, %v274_v20 }
  0x23   : > { %395 = vmatprep.mubr.f32.mxu0 %v715_v0 }
  0x26   : > { %654 = vmatmul.mubr.msk.f32.gmra.mxu0 %vm300_vm0, %v275_v21 }
  0x8a   : > { %v298_v26 = vpop.permute.xlu0 %297  ;;  %v288_v29 = vpop.permute.xlu1 %287 }
  0x8e   : > { %v293_v31 = vpop.permute.xlu0 %292  ;;  %v283_v37 = vpop.permute.xlu1 %282 }
  0x92   : > { %v421_v54 = vpop.permute.xlu0 %420  ;;  %v426_v60 = vpop.permute.xlu1 %425 }
  0x96   : > { %v436_v16 = vpop.permute.xlu1 %435 }
  0x97   : > { %v431_v3 = vpop.permute.xlu0 %430 }
  0xda   : > { %v379_v22 = vpop.f32.mrf.mxu0 }
  0xdb   : > { %v380_v44 = vadd.f32 %v379_v22, %v283_v37 }
  0xdc   : > { %v381_v23 = vpop.f32.mrf.mxu0 }
  0xdd   : > { %v382_v42 = vadd.f32 %v381_v23, %v283_v37  ;;  %v402_v49 = vmax.f32 %v380_v44, 0.0 }
  0xde   : > { %v385_v24 = vpop.f32.mrf.mxu0 }
  0xdf   : > { %v386_v40 = vadd.f32 %v385_v24, %v288_v29  ;;  %v403_v48 = vmax.f32 %v382_v42, 0.0 }
  0xe0   : > { %v387_v25 = vpop.f32.mrf.mxu0 }
  0xe1   : > { %v388_v38 = vadd.f32 %v387_v25, %v288_v29  ;;  %v404_v47 = vmax.f32 %v386_v40, 0.0 }
  0xe2   : > { %v391_v27 = vpop.f32.mrf.mxu0 }
  0xe3   : > { %v392_v36 = vadd.f32 %v391_v27, %v293_v31  ;;  %v405_v46 = vmax.f32 %v388_v38, 0.0 }
  0xe4   : > { %v393_v28 = vpop.f32.mrf.mxu0 }
  0xe5   : > { %v394_v34 = vadd.f32 %v393_v28, %v293_v31  ;;  %v406_v45 = vmax.f32 %v392_v36, 0.0 }
  0xe6   : > { %v397_v30 = vpop.f32.mrf.mxu0 }
  0xe7   : > { %v398_v32 = vadd.f32 %v397_v30, %v298_v26  ;;  %v407_v43 = vmax.f32 %v394_v34, 0.0 }
  0xe8   : > { %v399_v33 = vpop.f32.mrf.mxu0 }
  0xe9   : > { %v400_v35 = vadd.f32 %v399_v33, %v298_v26  ;;  %v408_v41 = vmax.f32 %v398_v32, 0.0 }
  0xeb   : > { %v409_v39 = vmax.f32 %v400_v35, 0.0 }
  0xed   : > { %474 = vmatprep.subr.mxu1 %v409_v39 }
  0xee   : > { %475 = vmatpush1.msra.mxu1 %v408_v41 }
  0xef   : > { %476 = vmatprep.subr.mxu1 %v407_v43 }
  0xf0   : > { %477 = vmatpush1.msra.mxu1 %v406_v45 }
  0xf1   : > { %478 = vmatprep.subr.mxu1 %v405_v46 }
  0xf2   : > { %479 = vmatpush1.msra.mxu1 %v404_v47 }
  0xf3   : > { %480 = vmatprep.subr.mxu1 %v403_v48 }
  0xf4   : > { %481 = vmatpush1.msra.mxu1 %v402_v49 }
  0xf5   : > { %655 = vmatmul.mubr.msk.f32.vlgmr.msra.gmra.mxu1 %vm300_vm0, %v410_v50 }
  0xf6   : > { %520 = vmatprep.mubr.f32.mxu1 %v715_v0 }
  0xf9   : > { %656 = vmatmul.mubr.msk.f32.gmra.mxu1 %vm300_vm0, %v411_v51 }
  0xfa   : > { %526 = vmatprep.mubr.f32.mxu1 %v715_v0 }
  0xfd   : > { %657 = vmatmul.mubr.msk.f32.gmra.mxu1 %vm300_vm0, %v412_v52 }
  0xfe   : > { %532 = vmatprep.mubr.f32.mxu1 %v715_v0 }
 0x101   : > { %658 = vmatmul.mubr.msk.f32.gmra.mxu1 %vm300_vm0, %v413_v53 }
 0x1b5   : > { %v516_v55 = vpop.f32.mrf.mxu1 }
 0x1b6   : > { %v517_v56 = vadd.f32 %v516_v55, %v421_v54 }
 0x1b7   : > { %v518_v57 = vpop.f32.mrf.mxu1 }
 0x1b8   : > { %v539_v58 = vadd.f32 %v517_v56, %v812_v15  ;;  %v519_v59 = vadd.f32 %v518_v57, %v421_v54 }
 0x1b9   : > { %v522_v61 = vpop.f32.mrf.mxu1 }
 0x1ba   : > { %547 = vst [vmem:[%s866_s15] sm:$0xff] %v539_v58  ;;  %v540_v62 = vadd.f32 %v519_v59, %v809_v14  ;;  %v523_v63 = vadd.f32 %v522_v61, %v426_v60 }
 0x1bb   : > { %v524_v0 = vpop.f32.mrf.mxu1 }
 0x1bc   : > { %548 = vst [vmem:[%s866_s15 + $0x8] sm:$0xff] %v540_v62  ;;  %v541_v1 = vadd.f32 %v523_v63, %v803_v12  ;;  %v525_v2 = vadd.f32 %v524_v0, %v426_v60 }
 0x1bd   : > { %v528_v4 = vpop.f32.mrf.mxu1 }
 0x1be   : > { %549 = vst [vmem:[%s866_s15 + $0x10] sm:$0xff] %v541_v1  ;;  %v542_v5 = vadd.f32 %v525_v2, %v797_v10  ;;  %v529_v11 = vadd.f32 %v528_v4, %v431_v3 }
 0x1bf   : > { %v530_v13 = vpop.f32.mrf.mxu1 }
 0x1c0   : > { %550 = vst [vmem:[%s866_s15 + $0x18] sm:$0xff] %v542_v5  ;;  %v543_v14 = vadd.f32 %v529_v11, %v794_v9  ;;  %v531_v15 = vadd.f32 %v530_v13, %v431_v3 }
 0x1c1   : > { %v534_v17 = vpop.f32.mrf.mxu1 }
 0x1c2   : > { %551 = vst [vmem:[%s866_s15 + $0x20] sm:$0xff] %v543_v14  ;;  %v544_v12 = vadd.f32 %v531_v15, %v791_v8  ;;  %v535_v18 = vadd.f32 %v534_v17, %v436_v16 }
 0x1c3   : > { %v536_v19 = vpop.f32.mrf.mxu1 }
 0x1c4   : > { %552 = vst [vmem:[%s866_s15 + $0x28] sm:$0xff] %v544_v12  ;;  %v545_v20 = vadd.f32 %v535_v18, %v789_v7  ;;  %v537_v21 = vadd.f32 %v536_v19, %v436_v16 }
 0x1c6   : > { %553 = vst [vmem:[%s866_s15 + $0x30] sm:$0xff] %v545_v20  ;;  %v546_v10 = vadd.f32 %v537_v21, %v787_v6 }
 0x1c8   : > { %554 = vst [vmem:[%s866_s15 + $0x38] sm:$0xff] %v546_v10 }
 0x1c9 PF: > { %s15_s20 = sadd.s32 1, %s713_s20   ;;  %s899_s18 = smov %s709_s19 }
 0x1ca   : > { %p12_p5 = scmp.ge.s32.totalorder %s15_s20, 4   ;;  %s900_s19 = smov %s902_s21 }
 0x1cc   :  { %14 = sbr.rel (!%p12_p5) target bundleno = 2 (0x2), region = 70 }

</bundles_post_ra>
